<compile_context>
chip_gen: v5e
topology: v5e:2x2
jax: 0.10.0
libtpu: 0.0.40
codegen_flags: <defaults>
</compile_context>

<pallas_src>
import functools
import math

import jax
import jax.numpy as jnp
from jax import lax
from jax.experimental import pallas as pl
from jax.experimental.pallas import tpu as pltpu


def _round_up(x, m):
    return (x + m - 1) // m * m


def _contrastive_kernel(q_ref, c_ref, lq_ref, lk_ref, out_ref,
                        sexp_s, msim_s, mcnt_s,
                        *, inv_temp, eps, tq, tk, pad_corr):
    i = pl.program_id(0)
    k = pl.program_id(1)
    nk = pl.num_programs(1)

    # ---- per-row-tile init (first column tile only) -------------------------
    @pl.when(k == 0)
    def _init():
        sexp_s[...] = jnp.zeros_like(sexp_s)
        msim_s[...] = jnp.zeros_like(msim_s)
        mcnt_s[...] = jnp.zeros_like(mcnt_s)

    # ---- similarity tile -----------------------------------------------------
    # Inputs are pre-normalized in the wrapper: a single MXU dot contracting
    # the shared feature dim (no transpose, no per-step rsqrt), f32 accumulate.
    sim = lax.dot_general(
        q_ref[...], c_ref[...],
        dimension_numbers=(((1,), (1,)), ((), ())),
        preferred_element_type=jnp.float32) * inv_temp              # (TQ, TK)

    # Positive mask = same label.  Padded columns carry a sentinel label that
    # never matches a real class id, so no validity masking is needed here.
    mask = (lq_ref[...] == lk_ref[...]).astype(jnp.float32)         # (TQ, TK)

    # Constant-shift exp: rows are L2-normalized so the global diagonal (1/T)
    # is the row max up to rounding -> numerically safe, no NxN max reduction.
    p = jnp.exp(sim - inv_temp)

    # TODO(synk): if a profile shows the XLU saturated by these three lane
    # reductions, fuse sum(p) / sum(mask*sim) into one (TQ,TK)x(TK,2) MXU dot.
    sexp_s[...] += jnp.sum(p, axis=1, keepdims=True)
    msim_s[...] += jnp.sum(mask * sim, axis=1, keepdims=True)
    mcnt_s[...] += jnp.sum(mask, axis=1, keepdims=True)

    # ---- diagonal correction (square tiles: global diagonal only when i==k) --
    # The self-pair is excluded from the positive mask in the reference; remove
    # its contribution exactly, only on the N/TQ diagonal tiles (nearly free).
    @pl.when(i == k)
    def _drop_diag():
        eye = (lax.broadcasted_iota(jnp.int32, (tq, tk), 0)
               == lax.broadcasted_iota(jnp.int32, (tq, tk), 1)).astype(jnp.float32)
        msim_s[...] -= jnp.sum(eye * sim, axis=1, keepdims=True)
        mcnt_s[...] -= 1.0

    # ---- finalize this row tile ----------------------------------------------
    @pl.when(k == nk - 1)
    def _finalize():
        sexp = sexp_s[...]
        if pad_corr:  # static: padded columns are exact zero rows -> sim = 0,
            # each contributes exp(-1/T) to every row's sum; remove once here.
            sexp = sexp - pad_corr
        lse = inv_temp + jnp.log(sexp)                               # (TQ, 1)
        # sum(mask * (sim - lse)) == sum(mask*sim) - lse*sum(mask)
        out_ref[...] = (msim_s[...] - lse * mcnt_s[...]) / (mcnt_s[...] + eps)


def _pick_tile(n, d, itemsize):
    """TQ == TK.  Single (8-padded) tile for small N; otherwise the largest of
    {512, 256, 128} that keeps >= 2 row tiles (megacore) and fits a
    conservative double-buffered VMEM budget."""
    if n <= 256:
        return _round_up(n, 8)
    budget = 24 << 20
    for t in (512, 256, 128):
        if n < 2 * t:
            continue
        need = 2 * 2 * t * d * itemsize + 3 * t * t * 4
        if need <= budget:
            return t
    return 128


def contrastive_loss(emb, labels, temperature=0.1, eps=1e-6, use_bf16=False):
    """emb: (N, D) float; labels: (N,) int or float. Returns scalar f32 loss.

    use_bf16=True streams the pre-normalized embeddings as bf16 (native MXU
    path on v6e/v7x, half the HBM traffic); accumulation stays f32.
    """
    n, d = emb.shape
    inv_temp = 1.0 / temperature

    # TODO(synk): the torch.isnan/isinf input/log_prob asserts are host-side
    # checks and are not reproduced here.

    # L2 normalization hoisted out of the kernel: one O(N*D) XLA pass instead
    # of re-normalizing every streamed column tile inside the grid.
    emb_f = emb.astype(jnp.float32)
    norm = jnp.sqrt(jnp.sum(emb_f * emb_f, axis=1, keepdims=True))
    emb_n = emb_f / jnp.maximum(norm, 1e-12)
    compute_dtype = jnp.bfloat16 if use_bf16 else jnp.float32
    emb_n = emb_n.astype(compute_dtype)
    itemsize = jnp.dtype(compute_dtype).itemsize

    tile = _pick_tile(n, d, itemsize)
    tq = tk = tile
    n_pad = _round_up(n, tile)
    pad_cols = n_pad - n
    # Padded rows are exact zero vectors -> sim = 0 against every real row, so
    # their total contribution to sum_j exp(sim - 1/T) is a compile-time const.
    pad_corr = float(pad_cols) * math.exp(-inv_temp) if pad_cols else 0.0

    if jnp.issubdtype(labels.dtype, jnp.integer):
        lab = labels.reshape(n).astype(jnp.int32)
        sentinel = jnp.iinfo(jnp.int32).min      # never matches a real class id
    else:
        lab = labels.reshape(n).astype(jnp.float32)
        sentinel = jnp.nan                       # NaN != anything
    if pad_cols:
        emb_n = jnp.pad(emb_n, ((0, pad_cols), (0, 0)))
        lab = jnp.pad(lab, (0, pad_cols), constant_values=sentinel)

    lab_col = lab.reshape(n_pad, 1)
    lab_row = lab.reshape(1, n_pad)              # lane-dense row orientation

    kernel = functools.partial(
        _contrastive_kernel,
        inv_temp=inv_temp, eps=eps, tq=tq, tk=tk, pad_corr=pad_corr)

    # Explicit VMEM limit: raises v5e's 16 MiB scoped default for large tiles,
    # stays within v7x's 64 MiB per-TC physical capacity.
    est = (2 * 2 * tile * d * itemsize           # double-buffered q/c tiles
           + 2 * (tile + tile + tile) * 4        # label col + label row + out
           + 3 * tile * 4                        # accumulator scratch
           + 3 * tile * tile * 4)                # sim / p / mask temporaries
    try:
        cap = int(pltpu.get_tpu_info().vmem_capacity_bytes)
    except Exception:
        cap = 64 << 20
    cap = max(min(cap, 64 << 20), 32 << 20)
    vmem_limit = int(min(max(2 * est, 32 << 20), cap))

    mean_log_prob_pos = pl.pallas_call(
        kernel,
        out_shape=jax.ShapeDtypeStruct((n_pad, 1), jnp.float32),
        grid_spec=pltpu.PrefetchScalarGridSpec(
            num_scalar_prefetch=0,
            grid=(n_pad // tq, n_pad // tk),
            in_specs=[
                pl.BlockSpec((tq, d), lambda i, k: (i, 0)),   # normalized rows
                # TODO(synk): add pipeline_mode=pl.Buffered(3) here if a trace
                # shows exposed DMA on the streamed column tile at small D.
                pl.BlockSpec((tk, d), lambda i, k: (k, 0)),   # streamed cols
                pl.BlockSpec((tq, 1), lambda i, k: (i, 0)),   # labels, (N,1)
                # Kept as a tiny (<=2 KiB) per-tile block: dynamic lane-dim
                # slicing of a resident full row is riskier to lower and the
                # per-step cost is negligible once tiles are 256-512 wide.
                pl.BlockSpec((1, tk), lambda i, k: (0, k)),   # labels, (1,N)
            ],
            out_specs=pl.BlockSpec((tq, 1), lambda i, k: (i, 0)),
            scratch_shapes=[
                pltpu.VMEM((tq, 1), jnp.float32),   # running sum exp(sim-1/T)
                pltpu.VMEM((tq, 1), jnp.float32),   # running sum mask*sim
                pltpu.VMEM((tq, 1), jnp.float32),   # running sum mask
            ],
        ),
        compiler_params=pltpu.CompilerParams(
            dimension_semantics=("parallel", "arbitrary"),
            vmem_limit_bytes=vmem_limit),
    )(emb_n, emb_n, lab_col, lab_row)

    return -jnp.mean(mean_log_prob_pos[:n, 0])


def _reference_loss(emb, labels, temperature=0.1, eps=1e-6):
    # Pure-JAX transliteration of the PyTorch module.
    emb = emb.astype(jnp.float32)
    norm = jnp.sqrt(jnp.sum(emb * emb, axis=1, keepdims=True))
    emb_n = emb / jnp.maximum(norm, 1e-12)
    sim = emb_n @ emb_n.T / temperature
    lab = labels.reshape(-1, 1)
    mask = (lab == lab.T).astype(jnp.float32)
    mask = mask * (1.0 - jnp.eye(emb.shape[0], dtype=jnp.float32))
    log_prob = sim - jax.nn.logsumexp(sim, axis=1, keepdims=True)
    mean_log_prob_pos = (mask * log_prob).sum(1) / (mask.sum(1) + eps)
    return -mean_log_prob_pos.mean()


if __name__ == "__main__":
    key = jax.random.PRNGKey(0)
    k1, k2, k3, k4 = jax.random.split(key, 4)

    # Case 1: small single-tile path (N=8, hidden=32), no padding.
    emb1 = jax.random.normal(k1, (8, 32), dtype=jnp.float32)
    lab1 = jax.random.randint(k2, (8,), 0, 3, dtype=jnp.int32)
    loss1 = jax.block_until_ready(contrastive_loss(emb1, lab1))
    ref1 = jax.block_until_ready(_reference_loss(emb1, lab1))
    assert jnp.isfinite(loss1), "non-finite loss (case 1)"
    assert abs(float(loss1) - float(ref1)) < 1e-3 * (1.0 + abs(float(ref1))), (
        float(loss1), float(ref1))

    # Case 2: multi-tile padded path (N=300 -> 384, 3x3 grid of 128-tiles,
    # sentinel-padded labels + finalize-time padding correction).
    emb2 = jax.random.normal(k3, (300, 64), dtype=jnp.float32)
    lab2 = jax.random.randint(k4, (300,), 0, 5, dtype=jnp.int32)
    loss2 = jax.block_until_ready(contrastive_loss(emb2, lab2))
    ref2 = jax.block_until_ready(_reference_loss(emb2, lab2))
    assert jnp.isfinite(loss2), "non-finite loss (case 2)"
    assert abs(float(loss2) - float(ref2)) < 1e-3 * (1.0 + abs(float(ref2))), (
        float(loss2), float(ref2))

    # Case 3: bf16 MXU / halved-HBM path (v6e/v7x perf knob), looser tolerance.
    loss3 = jax.block_until_ready(contrastive_loss(emb2, lab2, use_bf16=True))
    assert jnp.isfinite(loss3), "non-finite loss (case 3)"
    assert abs(float(loss3) - float(ref2)) < 3e-2 * (1.0 + abs(float(ref2))), (
        float(loss3), float(ref2))

    print("KERNEL_OK")
</pallas_src>

<mosaic_0001>
module attributes {stable_mosaic.version = 11 : i64} {
  func.func @_contrastive_kernel(%arg0: i32, %arg1: i32, %arg2: memref<8x32xf32, #tpu.memory_space<vmem>>, %arg3: memref<8x32xf32, #tpu.memory_space<vmem>>, %arg4: memref<8x1xi32, #tpu.memory_space<vmem>>, %arg5: memref<1x8xi32, #tpu.memory_space<vmem>>, %arg6: memref<8x1xf32, #tpu.memory_space<vmem>>, %arg7: memref<8x1xf32, #tpu.memory_space<vmem>>, %arg8: memref<8x1xf32, #tpu.memory_space<vmem>>, %arg9: memref<8x1xf32, #tpu.memory_space<vmem>>) attributes {dimension_semantics = [#tpu.dimension_semantics<parallel>, #tpu.dimension_semantics<arbitrary>], iteration_bounds = array<i64: 1, 1>, scalar_prefetch = 0 : i64, scratch_operands = 3 : i64, tpu.core_type = #tpu.core_type<tc>, window_params = [{transform_indices = @transform_0, window_bounds = array<i64: 8, 32>}, {transform_indices = @transform_1, window_bounds = array<i64: 8, 32>}, {transform_indices = @transform_2, window_bounds = array<i64: 8, 1>}, {transform_indices = @transform_3, window_bounds = array<i64: 1, 8>}, {transform_indices = @transform_4, window_bounds = array<i64: 8, 1>}]} {
    %c0_i32 = arith.constant 0 : i32
    %0 = arith.cmpi eq, %arg1, %c0_i32 : i32
    %1 = arith.extui %0 : i1 to i32
    %c0_i32_0 = arith.constant 0 : i32
    %2 = arith.cmpi ne, %1, %c0_i32_0 : i32
    scf.if %2 {
      %cst_28 = arith.constant 0.000000e+00 : f32
      %40 = vector.broadcast %cst_28 : f32 to vector<8x1xf32>
      %c0_29 = arith.constant 0 : index
      %c0_30 = arith.constant 0 : index
      %41 = vector.load %arg7[%c0_29, %c0_30] : memref<8x1xf32, #tpu.memory_space<vmem>>, vector<8x1xf32>
      tpu.vector_store %arg7[%c0_29, %c0_30], %40 {strides = array<i32>} : memref<8x1xf32, #tpu.memory_space<vmem>>, vector<8x1xf32>,
      %cst_31 = arith.constant 0.000000e+00 : f32
      %42 = vector.broadcast %cst_31 : f32 to vector<8x1xf32>
      %c0_32 = arith.constant 0 : index
      %c0_33 = arith.constant 0 : index
      %43 = vector.load %arg8[%c0_32, %c0_33] : memref<8x1xf32, #tpu.memory_space<vmem>>, vector<8x1xf32>
      tpu.vector_store %arg8[%c0_32, %c0_33], %42 {strides = array<i32>} : memref<8x1xf32, #tpu.memory_space<vmem>>, vector<8x1xf32>,
      %cst_34 = arith.constant 0.000000e+00 : f32
      %44 = vector.broadcast %cst_34 : f32 to vector<8x1xf32>
      %c0_35 = arith.constant 0 : index
      %c0_36 = arith.constant 0 : index
      %45 = vector.load %arg9[%c0_35, %c0_36] : memref<8x1xf32, #tpu.memory_space<vmem>>, vector<8x1xf32>
      tpu.vector_store %arg9[%c0_35, %c0_36], %44 {strides = array<i32>} : memref<8x1xf32, #tpu.memory_space<vmem>>, vector<8x1xf32>,
    } else {
    }
    %c0 = arith.constant 0 : index
    %c0_1 = arith.constant 0 : index
    %3 = vector.load %arg2[%c0, %c0_1] : memref<8x32xf32, #tpu.memory_space<vmem>>, vector<8x32xf32>
    %c0_2 = arith.constant 0 : index
    %c0_3 = arith.constant 0 : index
    %4 = vector.load %arg3[%c0_2, %c0_3] : memref<8x32xf32, #tpu.memory_space<vmem>>, vector<8x32xf32>
    %cst = arith.constant dense<0.000000e+00> : vector<8x8xf32>
    %5 = tpu.matmul %3, %4, %cst {dimension_numbers = #tpu.dot_dimension_numbers<[1], [1], [0], [0], [0, 0, 1, 0], [], []>} : vector<8x32xf32>, vector<8x32xf32>, vector<8x8xf32> -> vector<8x8xf32>
    %cst_4 = arith.constant 1.000000e+01 : f32
    %6 = vector.broadcast %cst_4 : f32 to vector<8x8xf32>
    %7 = arith.mulf %5, %6 : vector<8x8xf32>
    %c0_5 = arith.constant 0 : index
    %c0_6 = arith.constant 0 : index
    %8 = vector.load %arg4[%c0_5, %c0_6] : memref<8x1xi32, #tpu.memory_space<vmem>>, vector<8x1xi32>
    %c0_7 = arith.constant 0 : index
    %c0_8 = arith.constant 0 : index
    %9 = vector.load %arg5[%c0_7, %c0_8] : memref<1x8xi32, #tpu.memory_space<vmem>>, vector<1x8xi32>
    %10 = vector.broadcast %8 : vector<8x1xi32> to vector<8x8xi32>
    %11 = vector.broadcast %9 : vector<1x8xi32> to vector<8x8xi32>
    %12 = arith.cmpi eq, %10, %11 : vector<8x8xi32>
    %13 = arith.extui %12 : vector<8x8xi1> to vector<8x8xi32>
    %14 = arith.sitofp %13 : vector<8x8xi32> to vector<8x8xf32>
    %cst_9 = arith.constant 1.000000e+01 : f32
    %15 = vector.broadcast %cst_9 : f32 to vector<8x8xf32>
    %16 = arith.subf %7, %15 : vector<8x8xf32>
    %17 = math.exp %16 : vector<8x8xf32>
    %c0_10 = arith.constant 0 : index
    %c0_11 = arith.constant 0 : index
    %18 = vector.load %arg7[%c0_10, %c0_11] : memref<8x1xf32, #tpu.memory_space<vmem>>, vector<8x1xf32>
    %cst_12 = arith.constant dense<0.000000e+00> : vector<8xf32>
    %19 = vector.multi_reduction <add>, %17, %cst_12 [1] : vector<8x8xf32> to vector<8xf32>
    %20 = vector.shape_cast %19 : vector<8xf32> to vector<8x1xf32>
    %21 = arith.addf %18, %20 : vector<8x1xf32>
    %c0_13 = arith.constant 0 : index
    %c0_14 = arith.constant 0 : index
    %22 = vector.load %arg7[%c0_13, %c0_14] : memref<8x1xf32, #tpu.memory_space<vmem>>, vector<8x1xf32>
    tpu.vector_store %arg7[%c0_13, %c0_14], %21 {strides = array<i32>} : memref<8x1xf32, #tpu.memory_space<vmem>>, vector<8x1xf32>,
    %c0_15 = arith.constant 0 : index
    %c0_16 = arith.constant 0 : index
    %23 = vector.load %arg8[%c0_15, %c0_16] : memref<8x1xf32, #tpu.memory_space<vmem>>, vector<8x1xf32>
    %24 = arith.mulf %14, %7 : vector<8x8xf32>
    %cst_17 = arith.constant dense<0.000000e+00> : vector<8xf32>
    %25 = vector.multi_reduction <add>, %24, %cst_17 [1] : vector<8x8xf32> to vector<8xf32>
    %26 = vector.shape_cast %25 : vector<8xf32> to vector<8x1xf32>
    %27 = arith.addf %23, %26 : vector<8x1xf32>
    %c0_18 = arith.constant 0 : index
    %c0_19 = arith.constant 0 : index
    %28 = vector.load %arg8[%c0_18, %c0_19] : memref<8x1xf32, #tpu.memory_space<vmem>>, vector<8x1xf32>
    tpu.vector_store %arg8[%c0_18, %c0_19], %27 {strides = array<i32>} : memref<8x1xf32, #tpu.memory_space<vmem>>, vector<8x1xf32>,
    %c0_20 = arith.constant 0 : index
    %c0_21 = arith.constant 0 : index
    %29 = vector.load %arg9[%c0_20, %c0_21] : memref<8x1xf32, #tpu.memory_space<vmem>>, vector<8x1xf32>
    %cst_22 = arith.constant dense<0.000000e+00> : vector<8xf32>
    %30 = vector.multi_reduction <add>, %14, %cst_22 [1] : vector<8x8xf32> to vector<8xf32>
    %31 = vector.shape_cast %30 : vector<8xf32> to vector<8x1xf32>
    %32 = arith.addf %29, %31 : vector<8x1xf32>
    %c0_23 = arith.constant 0 : index
    %c0_24 = arith.constant 0 : index
    %33 = vector.load %arg9[%c0_23, %c0_24] : memref<8x1xf32, #tpu.memory_space<vmem>>, vector<8x1xf32>
    tpu.vector_store %arg9[%c0_23, %c0_24], %32 {strides = array<i32>} : memref<8x1xf32, #tpu.memory_space<vmem>>, vector<8x1xf32>,
    %34 = arith.cmpi eq, %arg0, %arg1 : i32
    %35 = arith.extui %34 : i1 to i32
    %c0_i32_25 = arith.constant 0 : i32
    %36 = arith.cmpi ne, %35, %c0_i32_25 : i32
    scf.if %36 {
      %40 = tpu.iota {dimensions = array<i32: 0>} : vector<8x8xi32>
      %41 = tpu.iota {dimensions = array<i32: 1>} : vector<8x8xi32>
      %42 = arith.cmpi eq, %40, %41 : vector<8x8xi32>
      %43 = arith.extui %42 : vector<8x8xi1> to vector<8x8xi32>
      %44 = arith.sitofp %43 : vector<8x8xi32> to vector<8x8xf32>
      %c0_28 = arith.constant 0 : index
      %c0_29 = arith.constant 0 : index
      %45 = vector.load %arg8[%c0_28, %c0_29] : memref<8x1xf32, #tpu.memory_space<vmem>>, vector<8x1xf32>
      %46 = arith.mulf %44, %7 : vector<8x8xf32>
      %cst_30 = arith.constant dense<0.000000e+00> : vector<8xf32>
      %47 = vector.multi_reduction <add>, %46, %cst_30 [1] : vector<8x8xf32> to vector<8xf32>
      %48 = vector.shape_cast %47 : vector<8xf32> to vector<8x1xf32>
      %49 = arith.subf %45, %48 : vector<8x1xf32>
      %c0_31 = arith.constant 0 : index
      %c0_32 = arith.constant 0 : index
      %50 = vector.load %arg8[%c0_31, %c0_32] : memref<8x1xf32, #tpu.memory_space<vmem>>, vector<8x1xf32>
      tpu.vector_store %arg8[%c0_31, %c0_32], %49 {strides = array<i32>} : memref<8x1xf32, #tpu.memory_space<vmem>>, vector<8x1xf32>,
      %c0_33 = arith.constant 0 : index
      %c0_34 = arith.constant 0 : index
      %51 = vector.load %arg9[%c0_33, %c0_34] : memref<8x1xf32, #tpu.memory_space<vmem>>, vector<8x1xf32>
      %cst_35 = arith.constant 1.000000e+00 : f32
      %52 = vector.broadcast %cst_35 : f32 to vector<8x1xf32>
      %53 = arith.subf %51, %52 : vector<8x1xf32>
      %c0_36 = arith.constant 0 : index
      %c0_37 = arith.constant 0 : index
      %54 = vector.load %arg9[%c0_36, %c0_37] : memref<8x1xf32, #tpu.memory_space<vmem>>, vector<8x1xf32>
      tpu.vector_store %arg9[%c0_36, %c0_37], %53 {strides = array<i32>} : memref<8x1xf32, #tpu.memory_space<vmem>>, vector<8x1xf32>,
    } else {
    }
    %c0_i32_26 = arith.constant 0 : i32
    %37 = arith.cmpi eq, %arg1, %c0_i32_26 : i32
    %38 = arith.extui %37 : i1 to i32
    %c0_i32_27 = arith.constant 0 : i32
    %39 = arith.cmpi ne, %38, %c0_i32_27 : i32
    scf.if %39 {
      %c0_28 = arith.constant 0 : index
      %c0_29 = arith.constant 0 : index
      %40 = vector.load %arg7[%c0_28, %c0_29] : memref<8x1xf32, #tpu.memory_space<vmem>>, vector<8x1xf32>
      %41 = math.log %40 : vector<8x1xf32>
      %cst_30 = arith.constant 1.000000e+01 : f32
      %42 = vector.broadcast %cst_30 : f32 to vector<8x1xf32>
      %43 = arith.addf %42, %41 : vector<8x1xf32>
      %c0_31 = arith.constant 0 : index
      %c0_32 = arith.constant 0 : index
      %44 = vector.load %arg8[%c0_31, %c0_32] : memref<8x1xf32, #tpu.memory_space<vmem>>, vector<8x1xf32>
      %c0_33 = arith.constant 0 : index
      %c0_34 = arith.constant 0 : index
      %45 = vector.load %arg9[%c0_33, %c0_34] : memref<8x1xf32, #tpu.memory_space<vmem>>, vector<8x1xf32>
      %46 = arith.mulf %43, %45 : vector<8x1xf32>
      %47 = arith.subf %44, %46 : vector<8x1xf32>
      %c0_35 = arith.constant 0 : index
      %c0_36 = arith.constant 0 : index
      %48 = vector.load %arg9[%c0_35, %c0_36] : memref<8x1xf32, #tpu.memory_space<vmem>>, vector<8x1xf32>
      %cst_37 = arith.constant 9.99999997E-7 : f32
      %49 = vector.broadcast %cst_37 : f32 to vector<8x1xf32>
      %50 = arith.addf %48, %49 : vector<8x1xf32>
      %51 = arith.divf %47, %50 : vector<8x1xf32>
      %c0_38 = arith.constant 0 : index
      %c0_39 = arith.constant 0 : index
      %52 = vector.load %arg6[%c0_38, %c0_39] : memref<8x1xf32, #tpu.memory_space<vmem>>, vector<8x1xf32>
      tpu.vector_store %arg6[%c0_38, %c0_39], %51 {strides = array<i32>} : memref<8x1xf32, #tpu.memory_space<vmem>>, vector<8x1xf32>,
    } else {
    }
    return
  }
  func.func @transform_0(%arg0: i32, %arg1: i32) -> (i32, i32) {
    %c0_i32 = arith.constant 0 : i32
    %c0_i32_0 = arith.constant 0 : i32
    return %arg0, %c0_i32 : i32, i32
  }
  func.func @transform_1(%arg0: i32, %arg1: i32) -> (i32, i32) {
    %c0_i32 = arith.constant 0 : i32
    %c0_i32_0 = arith.constant 0 : i32
    return %arg1, %c0_i32 : i32, i32
  }
  func.func @transform_2(%arg0: i32, %arg1: i32) -> (i32, i32) {
    %c0_i32 = arith.constant 0 : i32
    %c0_i32_0 = arith.constant 0 : i32
    return %arg0, %c0_i32 : i32, i32
  }
  func.func @transform_3(%arg0: i32, %arg1: i32) -> (i32, i32) {
    %c0_i32 = arith.constant 0 : i32
    %c0_i32_0 = arith.constant 0 : i32
    return %c0_i32, %arg1 : i32, i32
  }
  func.func @transform_4(%arg0: i32, %arg1: i32) -> (i32, i32) {
    %c0_i32 = arith.constant 0 : i32
    %c0_i32_0 = arith.constant 0 : i32
    return %arg0, %c0_i32 : i32, i32
  }
}

</mosaic_0001>

<bundles_post_ra>
// kernel: tpu_custom_call.1
= control target key start
LH: loop header
LB: loop body
LE: loop exit
PB: predicated region body
PF: predicated region fallthrough
CT: control target
= control target key end

     0   :  { %9 = vsyncpa [#allocation6], 0  ;;  %s199_s18 = smov [#allocation5]   ;;  %s255_s0 = inlined_call_operand.vmem [shape: f32[8,32], index: 0, kind: input, shape index: {}]   ;;  %s256_s1 = inlined_call_operand.hbm [shape: f32[8,32], index: 1, kind: input, shape index: {}]   ;;  %s257_s2 = inlined_call_operand.vmem [shape: s32[8,1], index: 2, kind: input, shape index: {}]   ;;  %s258_s3 = inlined_call_operand.vmem [shape: s32[1,8], index: 3, kind: input, shape index: {}]   ;;  %s259_s4 = inlined_call_operand.vmem [shape: f32[8,1], index: 4, kind: output, shape index: {}]  }
   0x1   :  { %s17_s17 = sshll.u32 %s256_s1, 4  ;;  %s19_s19 = sshll.u32 %s199_s18, 4  ;;  %s18_s17 = int_to_ptr.hbm [resolvable:$true] %s17_s17  ;;  %s20_s19 = int_to_ptr.vmem [resolvable:$true] %s19_s19 }
   0x2   :  { %22 = dma.hbm_to_vmem [thread:$0]  %s18_s17, 128, %s20_s19, [#allocation6]  }
   0x3   :  { %197 = dma.done.wait [#allocation6], 128  }
   0x4   :  { %198 = vsyncadd [#allocation6], 4294967168  ;;  %v200_v0 = vmov 0   ;;  %vm41_vm0 = vcmask 261120   ;;  %v40_v1 = vld [vmem:[#allocation5] sm:$0xff]  ;;  %v69_v2 = vld [vmem:[%s257_s2] sm:$0xff]  ;;  %v106_v9 = vlaneseq }
   0x5   :  { %165 = vset.pattern.permute.xlu0 %v200_v0  ;;  %156 = vmatpush.xpose.msk.msra.mxu0 %vm41_vm0, %v40_v1  ;;  %v39_v3 = vld [vmem:[%s255_s0] sm:$0xff]  ;;  %vm82_vm1 = vcmask 64512   ;;  %v201_v6 = vmov 0.0   ;;  %vm35_vm3 = vcmask 7168  }
   0x6   :  { %72 = vperm.xlu0 %165, %v69_v2   ;;  %v166_v4 = vld [vmem:[%s258_s3] ss:$0 sm:$0xff]  ;;  %38 = vst.msk [vmem:[#allocation4] sm:$0xff] %vm35_vm3, %v201_v6  ;;  %v107_v10 = vshrl.u32 %v106_v9, 7  ;;  %v109_v11 = vand.u32 127, %v106_v9 }
   0x7   :  { %36 = vst.msk [vmem:[#allocation2] sm:$0xff] %vm35_vm3, %v201_v6 }
   0x8   :  { %157 = vmatmul.msk.f32.vlgmr.msra.gmra.mxu0 %vm41_vm0, %v39_v3  ;;  %37 = vst.msk [vmem:[#allocation3] sm:$0xff] %vm35_vm3, %v201_v6  ;;  %vm110_vm4 = vcmp.eq.s32.totalorder %v107_v10, %v109_v11 }
   0x9   :  { %v160_v13 = vsel %vm110_vm4, 1.0, %v201_v6 }
   0xd   :  { %v96_v23 = vld [vmem:[#allocation4] sm:$0xff] }
   0xe   :  { %v81_v29 = vld [vmem:[#allocation2] sm:$0xff] }
   0xf   :  { %v89_v33 = vld [vmem:[#allocation3] sm:$0xff] }
  0x78   :  { %v73_v5 = vpop.permute.xlu0 %72 }
  0x79   :  { %vm75_vm2 = vcmp.eq.s32.totalorder %v73_v5, %v166_v4 }
  0x7a   :  { %v158_v7 = vsel %vm75_vm2, 1.0, %v201_v6 }
  0x7b   :  { %v97_v8 = vsel %vm82_vm1, %v158_v7, 0.0 }
  0x7c   :  { %98 = vadd.xlane.f32.xlu0 %v97_v8 }
  0x85   :  { %v65_v12 = vpop.f32.mrf.mxu0 }
  0x86   :  { %v68_v14 = vmul.f32 10.0, %v65_v12 }
  0x88   :  { %v159_v15 = vadd.f32 -10.0, %v68_v14  ;;  %v114_v16 = vmul.f32 %v160_v13, %v68_v14  ;;  %v90_v21 = vmul.f32 %v158_v7, %v68_v14 }
  0x8a   :  { %v79_v17 = vmul.f32 1.442695, %v159_v15  ;;  %v115_v18 = vsel %vm82_vm1, %v114_v16, 0.0  ;;  %v91_v22 = vsel %vm82_vm1, %v90_v21, 0.0 }
  0x8b   :  { %116 = vadd.xlane.f32.xlu2 %v115_v18 }
  0x8c   :  { %167 = vpow2.f32 %v79_v17 }
  0x92   :  { %v168_v19 = vpop.eup %167 }
  0x93   :  { %v83_v20 = vsel %vm82_vm1, %v168_v19, 0.0 }
  0x94   :  { %84 = vadd.xlane.f32.xlu1 %v83_v20 }
  0x9c   :  { %92 = vadd.xlane.f32.xlu1 %v91_v22 }
  0xef   :  { %v99_v24 = vpop.xlane.xlu0 %98 }
  0xf0   :  { %v100_v25 = vadd.f32 %v99_v24, %v96_v23 }
  0xf2   :  { %101 = vst.msk [vmem:[#allocation4] sm:$0xff] %vm35_vm3, %v100_v25 }
  0xf9   :  { %v120_v26 = vld [vmem:[#allocation4] sm:$0xff] }
  0xfa   :  { %v161_v27 = vadd.f32 -1.0, %v120_v26 }
  0xfc   :  { %122 = vst.msk [vmem:[#allocation4] sm:$0xff] %vm35_vm3, %v161_v27 }
  0xfe   :  { %v117_v41 = vpop.xlane.xlu2 %116 }
 0x103   :  { %v131_v28 = vld [vmem:[#allocation4] sm:$0xff] }
 0x104   :  { %v134_v30 = vadd.f32 1e-06, %v131_v28 }
 0x106   :  { %169 = vrcp.f32 %v134_v30  ;;  %vm140_vm5 = vweird.f32 %v134_v30  ;;  %v146_v46 = vand.u32 2147483648, %v134_v30  ;;  %v144_v49 = vand.u32 2147483647, %v134_v30 }
 0x107   :  { %v85_v31 = vpop.xlane.xlu1 %84 }
 0x108   :  { %v86_v32 = vadd.f32 %v85_v31, %v81_v29  ;;  %v147_v50 = vor.u32 1.1754944e-38, %v146_v46  ;;  %vm145_vm8 = vcmp.eq.f32.partialorder %v144_v49, 8.507059e+37 }
 0x10a   :  { %88 = vst.msk [vmem:[#allocation2] sm:$0xff] %vm35_vm3, %v86_v32 }
 0x10c   :  { %v170_v34 = vpop.eup %169 }
 0x10d   :  { %v136_v38 = vmul.f32 %v170_v34, %v134_v30  ;;  %vm141_vm6 = vweird.f32 %v170_v34 }
 0x10e   :  { %vm142_vm7 = vmor %vm140_vm5, %vm141_vm6 }
 0x10f   :  { %v93_v35 = vpop.xlane.xlu1 %92  ;;  %v137_v39 = vsub.f32 1.0, %v136_v38 }
 0x110   :  { %v94_v36 = vadd.f32 %v93_v35, %v89_v33 }
 0x111   :  { %v126_v37 = vld [vmem:[#allocation2] sm:$0xff]  ;;  %v138_v45 = vmul.f32 %v170_v34, %v137_v39 }
 0x112   :  { %171 = vlog2.f32 %v126_v37  ;;  %95 = vst.msk [vmem:[#allocation3] sm:$0xff] %vm35_vm3, %v94_v36 }
 0x113   :  { %v139_v48 = vadd.f32 %v170_v34, %v138_v45 }
 0x115   :  { %v143_v52 = vsel %vm142_vm7, %v170_v34, %v139_v48 }
 0x116   :  { %v148_v55 = vsel %vm145_vm8, %v147_v50, %v143_v52 }
 0x118   :  { %v172_v40 = vpop.eup %171 }
 0x119   :  { %v113_v42 = vld [vmem:[#allocation3] sm:$0xff]  ;;  %v128_v43 = vmul.f32 0.6931472, %v172_v40 }
 0x11a   :  { %v118_v44 = vsub.f32 %v113_v42, %v117_v41 }
 0x11b   :  { %v129_v47 = vadd.f32 10.0, %v128_v43 }
 0x11c   :  { %119 = vst.msk [vmem:[#allocation3] sm:$0xff] %vm35_vm3, %v118_v44 }
 0x11d   :  { %v132_v51 = vmul.f32 %v131_v28, %v129_v47 }
 0x123   :  { %v130_v53 = vld [vmem:[#allocation3] sm:$0xff] }
 0x124   :  { %v133_v54 = vsub.f32 %v130_v53, %v132_v51 }
 0x126   :  { %v149_v56 = vmul.f32 %v148_v55, %v133_v54 }
 0x128   :  { %150 = vst.msk [vmem:[%s259_s4] sm:$0xff] %vm35_vm3, %v149_v56 }
 0x129   :  { %155 = vsyncpa [#allocation6], 1 }

</bundles_post_ra>
